<compile_context>
chip_gen: v6e
topology: v6e:2x2x1
jax: 0.10.0
libtpu: 0.0.40
codegen_flags: <defaults>
</compile_context>

<pallas_src>
import jax
import jax.numpy as jnp
from jax import lax
from jax.experimental import pallas as pl
from jax.experimental.pallas import tpu as pltpu

BN_EPS = 1e-5
H1 = 300          # hidden 1 (not padded)
H2_PAD = 128      # hidden 2 padded 100 -> 128 (lane-dense)
OUT_PAD = 128     # lane-dense padded logits width; true logits are [:, :10]
PACK_COLS = 384   # packed-param lane width (multiple of 128, >= 300)


def _bn_relu_folded(h, gamma, beta):
    """Training-mode BatchNorm1d folded into one scale/shift per feature, then ReLU.

    h: (B, F) f32. gamma/beta: (1, F) f32. Padded features must have gamma=beta=0
    so they stay exactly zero (scale = shift = 0).
    """
    mean = jnp.mean(h, axis=0, keepdims=True)
    var = jnp.mean(h * h, axis=0, keepdims=True) - mean * mean      # single-pass var
    scale = gamma * lax.rsqrt(var + BN_EPS)                          # rsqrt -> EUP
    shift = beta - mean * scale
    return jnp.maximum(h * scale + shift, 0.0)                       # 1 mul + 1 add + max


def mlp_kernel(x_ref, w1_ref, w2_ref, w3_ref, p_ref, out_ref):
    # In-kernel cast: x arrives f32, becomes bf16 for the MXU (free VPU pack).
    x = x_ref[...].astype(jnp.bfloat16)                              # (B, 784) bf16

    # One consolidated DMA for all tiny per-feature params; static slices below.
    p = p_ref[...]                                                   # (8, 384) f32
    g1, be1 = p[0:1, 0:H1], p[1:2, 0:H1]                             # (1, 300)
    g2, be2 = p[2:3, 0:H2_PAD], p[3:4, 0:H2_PAD]                     # (1, 128), pad = 0
    b3 = p[4:5, 0:OUT_PAD]                                           # (1, 128), pad = 0

    # layer1: Linear(784,300) (bias cancelled by BN) + BN + ReLU
    h1 = jnp.dot(x, w1_ref[...], preferred_element_type=jnp.float32)
    h1 = _bn_relu_folded(h1, g1, be1)                                # (B, 300) f32

    # layer2: Linear(300,100) padded to 128 out-features + BN + ReLU (pad cols -> 0)
    h2 = jnp.dot(h1.astype(jnp.bfloat16), w2_ref[...],
                 preferred_element_type=jnp.float32)
    h2 = _bn_relu_folded(h2, g2, be2)                                # (B, 128) f32

    # layer3: Linear(100,10), K and N both padded to 128 (MXU-aligned, unmasked store)
    h3 = jnp.dot(h2.astype(jnp.bfloat16), w3_ref[...],
                 preferred_element_type=jnp.float32)
    out_ref[...] = h3 + b3


def mlp_forward(x, kparams):
    (w1, w2p, w3p, packed) = kparams
    B = x.shape[0]
    vmem = pl.BlockSpec(memory_space=pltpu.MemorySpace.VMEM)

    flops = 2 * B * (784 * H1 + H1 * H2_PAD + H2_PAD * OUT_PAD)
    bytes_accessed = (B * 784 * 4                                    # x (f32, cast in-kernel)
                      + (w1.size + w2p.size + w3p.size) * 2          # weights (bf16)
                      + packed.size * 4                              # packed BN/bias params
                      + B * OUT_PAD * 4)                             # out (f32)

    out = pl.pallas_call(
        mlp_kernel,
        out_shape=jax.ShapeDtypeStruct((B, OUT_PAD), jnp.float32),
        in_specs=[vmem] * 5,
        out_specs=vmem,
        cost_estimate=pl.CostEstimate(
            flops=flops, transcendentals=H1 + H2_PAD,
            bytes_accessed=bytes_accessed),
    )(x, w1, w2p, w3p, packed)
    return out[:, :10]


def init_params(key):
    """PyTorch-default-style init (uniform(-1/sqrt(fan_in), 1/sqrt(fan_in))), f32."""
    dims = [(28 * 28, 300), (300, 100), (100, 10)]
    keys = jax.random.split(key, 2 * len(dims))
    lin = []
    for i, (fan_in, fan_out) in enumerate(dims):
        bound = 1.0 / (fan_in ** 0.5)
        w = jax.random.uniform(keys[2 * i], (fan_in, fan_out), jnp.float32, -bound, bound)
        b = jax.random.uniform(keys[2 * i + 1], (1, fan_out), jnp.float32, -bound, bound)
        lin.append((w, b))
    (w1, b1), (w2, b2), (w3, b3) = lin
    g1, be1 = jnp.ones((1, 300), jnp.float32), jnp.zeros((1, 300), jnp.float32)
    g2, be2 = jnp.ones((1, 100), jnp.float32), jnp.zeros((1, 100), jnp.float32)
    return (w1, b1, g1, be1, w2, b2, g2, be2, w3, b3)


def prepare_kernel_params(params):
    """Cast weights to bf16, drop b1/b2 (cancelled by BN), pad hidden-2 & logits to 128
    lanes, and pack all tiny per-feature params into one (8, 384) f32 array."""
    (w1, b1, g1, be1, w2, b2, g2, be2, w3, b3) = params
    del b1, b2  # exactly cancelled by training-mode BN mean subtraction

    # Weights: w1 unpadded (bf16); w2 padded to 128 out-features; w3 padded to 128x128.
    w1b = w1.astype(jnp.bfloat16)                                            # (784, 300)
    w2p = (jnp.zeros((H1, H2_PAD), jnp.float32)
           .at[:, :100].set(w2).astype(jnp.bfloat16))                        # (300, 128)
    w3p = (jnp.zeros((H2_PAD, OUT_PAD), jnp.float32)
           .at[:100, :10].set(w3).astype(jnp.bfloat16))                      # (128, 128)

    # Packed per-feature params. Padded gamma/beta MUST stay 0 so padded hidden-2
    # features remain exactly zero after BN+ReLU.
    packed = jnp.zeros((8, PACK_COLS), jnp.float32)
    packed = packed.at[0, :H1].set(g1[0])      # gamma1
    packed = packed.at[1, :H1].set(be1[0])     # beta1
    packed = packed.at[2, :100].set(g2[0])     # gamma2 (cols 100:128 stay 0)
    packed = packed.at[3, :100].set(be2[0])    # beta2  (cols 100:128 stay 0)
    packed = packed.at[4, :10].set(b3[0])      # bias3  (cols  10:128 stay 0)

    return (w1b, w2p, w3p, packed)


def reference_forward(x, params):
    """Mirrors the PyTorch module (bias + standard training-mode BN) at matching
    mixed precision (bf16 matmul inputs, f32 accumulation)."""
    (w1, b1, g1, be1, w2, b2, g2, be2, w3, b3) = params

    def dot_bf16(a, w):
        return jnp.dot(a.astype(jnp.bfloat16), w.astype(jnp.bfloat16),
                       preferred_element_type=jnp.float32)

    def bn_relu(h, g, be):
        m = jnp.mean(h, axis=0, keepdims=True)
        v = jnp.mean((h - m) ** 2, axis=0, keepdims=True)
        return jnp.maximum(g * (h - m) / jnp.sqrt(v + BN_EPS) + be, 0.0)

    h1 = bn_relu(dot_bf16(x, w1) + b1, g1, be1)
    h2 = bn_relu(dot_bf16(h1, w2) + b2, g2, be2)
    return dot_bf16(h2, w3) + b3


if __name__ == "__main__":
    key = jax.random.PRNGKey(0)
    k_x, k_p = jax.random.split(key)

    B = 8  # small, sublane-aligned batch (BatchNorm needs batch > 1)
    x = jax.random.normal(k_x, (B, 28 * 28), jnp.float32)

    params = init_params(k_p)
    kparams = prepare_kernel_params(params)

    out = mlp_forward(x, kparams)
    jax.block_until_ready(out)

    ref = reference_forward(x, params)
    assert out.shape == (B, 10)
    # Biases before BN cancel exactly; padded gamma/beta are zero so padding is exact;
    # residual diffs come only from bf16 rounding order.
    assert jnp.allclose(out, ref, atol=1e-2, rtol=1e-2), \
        f"max abs diff {jnp.max(jnp.abs(out - ref))}"

    print("KERNEL_OK")
</pallas_src>

<mosaic_0001>
module attributes {stable_mosaic.version = 11 : i64} {
  func.func @mlp_kernel(%arg0: memref<8x784xf32, #tpu.memory_space<vmem>>, %arg1: memref<784x300xbf16, #tpu.memory_space<vmem>>, %arg2: memref<300x128xbf16, #tpu.memory_space<vmem>>, %arg3: memref<128x128xbf16, #tpu.memory_space<vmem>>, %arg4: memref<8x384xf32, #tpu.memory_space<vmem>>, %arg5: memref<8x128xf32, #tpu.memory_space<vmem>>) attributes {dimension_semantics = [], scalar_prefetch = 0 : i64, scratch_operands = 0 : i64, tpu.core_type = #tpu.core_type<tc>} {
    %c0 = arith.constant 0 : index
    %c0_0 = arith.constant 0 : index
    %0 = vector.load %arg0[%c0, %c0_0] : memref<8x784xf32, #tpu.memory_space<vmem>>, vector<8x784xf32>
    %1 = arith.truncf %0 : vector<8x784xf32> to vector<8x784xbf16>
    %c0_1 = arith.constant 0 : index
    %c0_2 = arith.constant 0 : index
    %2 = vector.load %arg4[%c0_1, %c0_2] : memref<8x384xf32, #tpu.memory_space<vmem>>, vector<8x384xf32>
    %3 = vector.extract_strided_slice %2 {offsets = [0, 0], sizes = [1, 300], strides = [1, 1]} : vector<8x384xf32> to vector<1x300xf32>
    %4 = vector.extract_strided_slice %2 {offsets = [1, 0], sizes = [1, 300], strides = [1, 1]} : vector<8x384xf32> to vector<1x300xf32>
    %5 = vector.extract_strided_slice %2 {offsets = [2, 0], sizes = [1, 128], strides = [1, 1]} : vector<8x384xf32> to vector<1x128xf32>
    %6 = vector.extract_strided_slice %2 {offsets = [3, 0], sizes = [1, 128], strides = [1, 1]} : vector<8x384xf32> to vector<1x128xf32>
    %7 = vector.extract_strided_slice %2 {offsets = [4, 0], sizes = [1, 128], strides = [1, 1]} : vector<8x384xf32> to vector<1x128xf32>
    %c0_3 = arith.constant 0 : index
    %c0_4 = arith.constant 0 : index
    %8 = vector.load %arg1[%c0_3, %c0_4] : memref<784x300xbf16, #tpu.memory_space<vmem>>, vector<784x300xbf16>
    %cst = arith.constant dense<0.000000e+00> : vector<8x300xf32>
    %9 = tpu.matmul %1, %8, %cst {dimension_numbers = #tpu.dot_dimension_numbers<[1], [0], [0], [1], [0, 0, 1, 1], [], []>} : vector<8x784xbf16>, vector<784x300xbf16>, vector<8x300xf32> -> vector<8x300xf32>
    %cst_5 = arith.constant dense<0.000000e+00> : vector<300xf32>
    %10 = vector.multi_reduction <add>, %9, %cst_5 [0] : vector<8x300xf32> to vector<300xf32>
    %11 = vector.shape_cast %10 : vector<300xf32> to vector<1x300xf32>
    %cst_6 = arith.constant 8.000000e+00 : f32
    %12 = vector.broadcast %cst_6 : f32 to vector<1x300xf32>
    %13 = arith.divf %11, %12 : vector<1x300xf32>
    %14 = arith.mulf %9, %9 : vector<8x300xf32>
    %cst_7 = arith.constant dense<0.000000e+00> : vector<300xf32>
    %15 = vector.multi_reduction <add>, %14, %cst_7 [0] : vector<8x300xf32> to vector<300xf32>
    %16 = vector.shape_cast %15 : vector<300xf32> to vector<1x300xf32>
    %cst_8 = arith.constant 8.000000e+00 : f32
    %17 = vector.broadcast %cst_8 : f32 to vector<1x300xf32>
    %18 = arith.divf %16, %17 : vector<1x300xf32>
    %19 = arith.mulf %13, %13 : vector<1x300xf32>
    %20 = arith.subf %18, %19 : vector<1x300xf32>
    %cst_9 = arith.constant 9.99999974E-6 : f32
    %21 = vector.broadcast %cst_9 : f32 to vector<1x300xf32>
    %22 = arith.addf %20, %21 : vector<1x300xf32>
    %23 = math.rsqrt %22 : vector<1x300xf32>
    %24 = arith.mulf %3, %23 : vector<1x300xf32>
    %25 = arith.mulf %13, %24 : vector<1x300xf32>
    %26 = arith.subf %4, %25 : vector<1x300xf32>
    %27 = vector.broadcast %24 : vector<1x300xf32> to vector<8x300xf32>
    %28 = arith.mulf %9, %27 : vector<8x300xf32>
    %29 = vector.broadcast %26 : vector<1x300xf32> to vector<8x300xf32>
    %30 = arith.addf %28, %29 : vector<8x300xf32>
    %cst_10 = arith.constant 0.000000e+00 : f32
    %31 = vector.broadcast %cst_10 : f32 to vector<8x300xf32>
    %32 = arith.maximumf %30, %31 : vector<8x300xf32>
    %33 = arith.truncf %32 : vector<8x300xf32> to vector<8x300xbf16>
    %c0_11 = arith.constant 0 : index
    %c0_12 = arith.constant 0 : index
    %34 = vector.load %arg2[%c0_11, %c0_12] : memref<300x128xbf16, #tpu.memory_space<vmem>>, vector<300x128xbf16>
    %cst_13 = arith.constant dense<0.000000e+00> : vector<8x128xf32>
    %35 = tpu.matmul %33, %34, %cst_13 {dimension_numbers = #tpu.dot_dimension_numbers<[1], [0], [0], [1], [0, 0, 1, 1], [], []>} : vector<8x300xbf16>, vector<300x128xbf16>, vector<8x128xf32> -> vector<8x128xf32>
    %cst_14 = arith.constant dense<0.000000e+00> : vector<128xf32>
    %36 = vector.multi_reduction <add>, %35, %cst_14 [0] : vector<8x128xf32> to vector<128xf32>
    %37 = vector.shape_cast %36 : vector<128xf32> to vector<1x128xf32>
    %cst_15 = arith.constant 8.000000e+00 : f32
    %38 = vector.broadcast %cst_15 : f32 to vector<1x128xf32>
    %39 = arith.divf %37, %38 : vector<1x128xf32>
    %40 = arith.mulf %35, %35 : vector<8x128xf32>
    %cst_16 = arith.constant dense<0.000000e+00> : vector<128xf32>
    %41 = vector.multi_reduction <add>, %40, %cst_16 [0] : vector<8x128xf32> to vector<128xf32>
    %42 = vector.shape_cast %41 : vector<128xf32> to vector<1x128xf32>
    %cst_17 = arith.constant 8.000000e+00 : f32
    %43 = vector.broadcast %cst_17 : f32 to vector<1x128xf32>
    %44 = arith.divf %42, %43 : vector<1x128xf32>
    %45 = arith.mulf %39, %39 : vector<1x128xf32>
    %46 = arith.subf %44, %45 : vector<1x128xf32>
    %cst_18 = arith.constant 9.99999974E-6 : f32
    %47 = vector.broadcast %cst_18 : f32 to vector<1x128xf32>
    %48 = arith.addf %46, %47 : vector<1x128xf32>
    %49 = math.rsqrt %48 : vector<1x128xf32>
    %50 = arith.mulf %5, %49 : vector<1x128xf32>
    %51 = arith.mulf %39, %50 : vector<1x128xf32>
    %52 = arith.subf %6, %51 : vector<1x128xf32>
    %53 = vector.broadcast %50 : vector<1x128xf32> to vector<8x128xf32>
    %54 = arith.mulf %35, %53 : vector<8x128xf32>
    %55 = vector.broadcast %52 : vector<1x128xf32> to vector<8x128xf32>
    %56 = arith.addf %54, %55 : vector<8x128xf32>
    %cst_19 = arith.constant 0.000000e+00 : f32
    %57 = vector.broadcast %cst_19 : f32 to vector<8x128xf32>
    %58 = arith.maximumf %56, %57 : vector<8x128xf32>
    %59 = arith.truncf %58 : vector<8x128xf32> to vector<8x128xbf16>
    %c0_20 = arith.constant 0 : index
    %c0_21 = arith.constant 0 : index
    %60 = vector.load %arg3[%c0_20, %c0_21] : memref<128x128xbf16, #tpu.memory_space<vmem>>, vector<128x128xbf16>
    %cst_22 = arith.constant dense<0.000000e+00> : vector<8x128xf32>
    %61 = tpu.matmul %59, %60, %cst_22 {dimension_numbers = #tpu.dot_dimension_numbers<[1], [0], [0], [1], [0, 0, 1, 1], [], []>} : vector<8x128xbf16>, vector<128x128xbf16>, vector<8x128xf32> -> vector<8x128xf32>
    %62 = vector.broadcast %7 : vector<1x128xf32> to vector<8x128xf32>
    %63 = arith.addf %61, %62 : vector<8x128xf32>
    %c0_23 = arith.constant 0 : index
    %c0_24 = arith.constant 0 : index
    %64 = vector.load %arg5[%c0_23, %c0_24] : memref<8x128xf32, #tpu.memory_space<vmem>>, vector<8x128xf32>
    tpu.vector_store %arg5[%c0_23, %c0_24], %63 {strides = array<i32>} : memref<8x128xf32, #tpu.memory_space<vmem>>, vector<8x128xf32>,
    return
  }
}

</mosaic_0001>

<bundles_post_ra>
// kernel: tpu_custom_call.1
= control target key start
LH: loop header
LB: loop body
LE: loop exit
PB: predicated region body
PF: predicated region fallthrough
CT: control target
= control target key end

     0   :  { %vm1019_vm0 = vcmask 130048   ;;  %s3108_s0 = inlined_call_operand.vmem [shape: f32[8,784], index: 0, kind: input, shape index: {}]   ;;  %s3109_s1 = inlined_call_operand.vmem [shape: bf16[784,300], index: 1, kind: input, shape index: {}]   ;;  %s3110_s2 = inlined_call_operand.vmem [shape: bf16[300,128], index: 2, kind: input, shape index: {}]   ;;  %s3111_s3 = inlined_call_operand.vmem [shape: bf16[128,128], index: 3, kind: input, shape index: {}]   ;;  %s3112_s4 = inlined_call_operand.vmem [shape: f32[8,384], index: 4, kind: input, shape index: {}]   ;;  %s3113_s5 = inlined_call_operand.hbm [shape: f32[8,128], index: 5, kind: output, shape index: {}]  }
   0x1   :  { %v2180_v0 = vld [vmem:[%s3109_s1 + $0xac] ss:$12 sps:$4 sm:$0xff]   ;;  %v2184_v2 = vld [vmem:[%s3109_s1 + $0xa8] ss:$12 sps:$4 sm:$0xff]   ;;  %v2190_v6 = vld [vmem:[%s3109_s1 + $0x90] ss:$12 sps:$4 sm:$0xff]  }
   0x2   :  { %v2182_v1 = vld [vmem:[%s3109_s1 + $0x22c] ss:$12 sps:$4 sm:$0xff]   ;;  %1023 = vmatprep.subr.bf16.mxu0 %v2180_v0  ;;  %v2185_v3 = vld [vmem:[%s3109_s1 + $0x228] ss:$12 sps:$4 sm:$0xff]   ;;  %v2191_v7 = vld [vmem:[%s3109_s1 + $0x210] ss:$12 sps:$4 sm:$0xff]  }
   0x3   :  { %1064 = vmatprep.subr.bf16.mxu1 %v2182_v1  ;;  %v2186_v4 = vld [vmem:[%s3109_s1 + $0x94] ss:$12 sps:$4 sm:$0xff]   ;;  %1024 = vmatpush1.bf16.msra.mxu0 %v2184_v2  ;;  %v2192_v8 = vld [vmem:[%s3109_s1 + $0x7c] ss:$12 sps:$4 sm:$0xff]   ;;  %v2196_v10 = vld [vmem:[%s3109_s1 + $0x78] ss:$12 sps:$4 sm:$0xff]  }
   0x4   :  { %1065 = vmatpush1.bf16.msra.mxu1 %v2185_v3  ;;  %v2188_v5 = vld [vmem:[%s3109_s1 + $0x214] ss:$12 sps:$4 sm:$0xff]   ;;  %1025 = vmatprep.subr.bf16.mxu0 %v2186_v4  ;;  %v2194_v9 = vld [vmem:[%s3109_s1 + $0x1fc] ss:$12 sps:$4 sm:$0xff]   ;;  %v2197_v11 = vld [vmem:[%s3109_s1 + $0x1f8] ss:$12 sps:$4 sm:$0xff]  }
   0x5   :  { %1066 = vmatprep.subr.bf16.mxu1 %v2188_v5  ;;  %v2198_v12 = vld [vmem:[%s3109_s1 + $0x64] ss:$12 sps:$4 sm:$0xff]   ;;  %v2202_v14 = vld [vmem:[%s3109_s1 + $0x60] ss:$12 sps:$4 sm:$0xff]   ;;  %v2208_v18 = vld [vmem:[%s3109_s1 + $0x48] ss:$12 sps:$4 sm:$0xff]  }
   0x6   :  { %v2200_v13 = vld [vmem:[%s3109_s1 + $0x1e4] ss:$12 sps:$4 sm:$0xff]   ;;  %v2203_v15 = vld [vmem:[%s3109_s1 + $0x1e0] ss:$12 sps:$4 sm:$0xff]   ;;  %v2209_v19 = vld [vmem:[%s3109_s1 + $0x1c8] ss:$12 sps:$4 sm:$0xff]  }
   0x7   :  { %1026 = vmatpush1.bf16.msra.mxu0 %v2190_v6  ;;  %v2204_v16 = vld [vmem:[%s3109_s1 + $0x4c] ss:$12 sps:$4 sm:$0xff]   ;;  %v2210_v20 = vld [vmem:[%s3109_s1 + $0x34] ss:$12 sps:$4 sm:$0xff]   ;;  %v2214_v22 = vld [vmem:[%s3109_s1 + $0x30] ss:$12 sps:$4 sm:$0xff]  }
   0x8   :  { %1067 = vmatpush1.bf16.msra.mxu1 %v2191_v7  ;;  %1027 = vmatprep.subr.bf16.mxu0 %v2192_v8  ;;  %v2206_v17 = vld [vmem:[%s3109_s1 + $0x1cc] ss:$12 sps:$4 sm:$0xff]   ;;  %v2212_v21 = vld [vmem:[%s3109_s1 + $0x1b4] ss:$12 sps:$4 sm:$0xff]   ;;  %v2215_v23 = vld [vmem:[%s3109_s1 + $0x1b0] ss:$12 sps:$4 sm:$0xff]  }
   0x9   :  { %1068 = vmatprep.subr.bf16.mxu1 %v2194_v9  ;;  %v2216_v24 = vld [vmem:[%s3109_s1 + $0x1c] ss:$12 sps:$4 sm:$0xff]   ;;  %v2220_v26 = vld [vmem:[%s3109_s1 + $0x18] ss:$12 sps:$4 sm:$0xff]   ;;  %v2226_v30 = vld [vmem:[%s3109_s1] ss:$12 sps:$4 sm:$0xff]  }
   0xa   :  { %v2218_v25 = vld [vmem:[%s3109_s1 + $0x19c] ss:$12 sps:$4 sm:$0xff]   ;;  %v2221_v27 = vld [vmem:[%s3109_s1 + $0x198] ss:$12 sps:$4 sm:$0xff]   ;;  %v2227_v31 = vld [vmem:[%s3109_s1 + $0x180] ss:$12 sps:$4 sm:$0xff]  }
   0xb   :  { %1028 = vmatpush1.bf16.msra.mxu0 %v2196_v10  ;;  %v2222_v28 = vld [vmem:[%s3109_s1 + $0x4] ss:$12 sps:$4 sm:$0xff]   ;;  %v2228_v32 = vld [vmem:[%s3109_s1 + $0x16c] ss:$12 sps:$4 sm:$0xff]   ;;  %v2232_v34 = vld [vmem:[%s3109_s1 + $0x168] ss:$12 sps:$4 sm:$0xff]  }
   0xc   :  { %1069 = vmatpush1.bf16.msra.mxu1 %v2197_v11  ;;  %1029 = vmatprep.subr.bf16.mxu0 %v2198_v12  ;;  %v2224_v29 = vld [vmem:[%s3109_s1 + $0x184] ss:$12 sps:$4 sm:$0xff]   ;;  %v2230_v33 = vld [vmem:[%s3109_s1 + $0x2ec] ss:$12 sps:$4 sm:$0xff]   ;;  %v2233_v35 = vld [vmem:[%s3109_s1 + $0x2e8] ss:$12 sps:$4 sm:$0xff]  }
   0xd   :  { %1070 = vmatprep.subr.bf16.mxu1 %v2200_v13  ;;  %v2234_v36 = vld [vmem:[%s3109_s1 + $0x154] ss:$12 sps:$4 sm:$0xff]   ;;  %v2238_v38 = vld [vmem:[%s3109_s1 + $0x150] ss:$12 sps:$4 sm:$0xff]   ;;  %v2244_v42 = vld [vmem:[%s3109_s1 + $0x138] ss:$12 sps:$4 sm:$0xff]  }
   0xe   :  { %v2236_v37 = vld [vmem:[%s3109_s1 + $0x2d4] ss:$12 sps:$4 sm:$0xff]   ;;  %v2239_v39 = vld [vmem:[%s3109_s1 + $0x2d0] ss:$12 sps:$4 sm:$0xff]   ;;  %v2245_v43 = vld [vmem:[%s3109_s1 + $0x2b8] ss:$12 sps:$4 sm:$0xff]  }
   0xf   :  { %1030 = vmatpush1.bf16.msra.mxu0 %v2202_v14  ;;  %v2240_v40 = vld [vmem:[%s3109_s1 + $0x13c] ss:$12 sps:$4 sm:$0xff]   ;;  %v2246_v44 = vld [vmem:[%s3109_s1 + $0x124] ss:$12 sps:$4 sm:$0xff]   ;;  %v2250_v47 = vld [vmem:[%s3109_s1 + $0x120] ss:$12 sps:$4 sm:$0xff]  }
  0x10   :  { %1071 = vmatpush1.bf16.msra.mxu1 %v2203_v15  ;;  %1031 = vmatprep.subr.bf16.mxu0 %v2204_v16  ;;  %v2242_v41 = vld [vmem:[%s3109_s1 + $0x2bc] ss:$12 sps:$4 sm:$0xff]   ;;  %v2248_v45 = vld [vmem:[%s3109_s1 + $0x2a4] ss:$12 sps:$4 sm:$0xff]   ;;  %v2251_v48 = vld [vmem:[%s3109_s1 + $0x2a0] ss:$12 sps:$4 sm:$0xff]  }
  0x11   :  { %1072 = vmatprep.subr.bf16.mxu1 %v2206_v17  ;;  %v23_v46 = vld [vmem:[%s3108_s0 + $0x8] sm:$0xff]  ;;  %v25_v50 = vld [vmem:[%s3108_s0 + $0x18] sm:$0xff]  ;;  %v2258_v56 = vld [vmem:[%s3109_s1 + $0xf4] ss:$12 sps:$4 sm:$0xff]   ;;  %v2433_v16 = vmov 0  }
  0x12   :  { %v2614_v49 = vpack.c.bf16 %v23_v46, %v23_v46  ;;  %v2252_v51 = vld [vmem:[%s3109_s1 + $0x10c] ss:$12 sps:$4 sm:$0xff]   ;;  %v2622_v52 = vpack.c.bf16 %v25_v50, %v25_v50  ;;  %v2256_v54 = vld [vmem:[%s3109_s1 + $0x108] ss:$12 sps:$4 sm:$0xff]   ;;  %v2262_v58 = vld [vmem:[%s3109_s1 + $0xf0] ss:$12 sps:$4 sm:$0xff]  }
  0x13   :  { %1032 = vmatpush1.bf16.msra.mxu0 %v2208_v18  ;;  %v2254_v53 = vld [vmem:[%s3109_s1 + $0x28c] ss:$12 sps:$4 sm:$0xff]   ;;  %v2257_v55 = vld [vmem:[%s3109_s1 + $0x288] ss:$12 sps:$4 sm:$0xff]   ;;  %v2263_v59 = vld [vmem:[%s3109_s1 + $0x270] ss:$12 sps:$4 sm:$0xff]  }
  0x14   :  { %1073 = vmatpush1.bf16.msra.mxu1 %v2209_v19  ;;  %1033 = vmatprep.subr.bf16.mxu0 %v2210_v20  ;;  %v2260_v57 = vld [vmem:[%s3109_s1 + $0x274] ss:$12 sps:$4 sm:$0xff]   ;;  %v2264_v60 = vld [vmem:[%s3109_s1 + $0xdc] ss:$12 sps:$4 sm:$0xff]   ;;  %v2268_v62 = vld [vmem:[%s3109_s1 + $0xd8] ss:$12 sps:$4 sm:$0xff]  }
  0x15   :  { %1074 = vmatprep.subr.bf16.mxu1 %v2212_v21  ;;  %1055 = vmatprep.mubr.bf16.mxu0 %v2614_v49  ;;  %v2266_v61 = vld [vmem:[%s3109_s1 + $0x25c] ss:$12 sps:$4 sm:$0xff]   ;;  %v2269_v63 = vld [vmem:[%s3109_s1 + $0x258] ss:$12 sps:$4 sm:$0xff]   ;;  %v2274_v2 = vld [vmem:[%s3109_s1 + $0xc0] ss:$12 sps:$4 sm:$0xff]  }
  0x16   :  { %1096 = vmatprep.mubr.bf16.mxu1 %v2622_v52  ;;  %v2270_v0 = vld [vmem:[%s3109_s1 + $0xc4] ss:$12 sps:$4 sm:$0xff]   ;;  %v2275_v3 = vld [vmem:[%s3109_s1 + $0x240] ss:$12 sps:$4 sm:$0xff]   ;;  %v2276_v10 = vld [vmem:[%s3109_s1 + $0x3a8] ss:$12 sps:$4 sm:$0xff]  }
  0x17   :  { %1034 = vmatpush1.bf16.msra.mxu0 %v2214_v22  ;;  %v2272_v1 = vld [vmem:[%s3109_s1 + $0x244] ss:$12 sps:$4 sm:$0xff]   ;;  %v2278_v6 = vld [vmem:[%s3109_s1 + $0x3ac] ss:$12 sps:$4 sm:$0xff]   ;;  %v2284_v12 = vld [vmem:[%s3109_s1 + $0x394] ss:$12 sps:$4 sm:$0xff]  }
  0x18   :  { %1075 = vmatpush1.bf16.msra.mxu1 %v2215_v23  ;;  %1035 = vmatprep.subr.bf16.mxu0 %v2216_v24  ;;  %v22_v4 = vld [vmem:[%s3108_s0] sm:$0xff]  ;;  %v24_v5 = vld [vmem:[%s3108_s0 + $0x10] sm:$0xff]  ;;  %v2288_v17 = vld [vmem:[%s3109_s1 + $0x37c] ss:$12 sps:$4 sm:$0xff]  }
  0x19   :  { %1076 = vmatprep.subr.bf16.mxu1 %v2218_v25  ;;  %v2281_v7 = vld [vmem:[%s3109_s1 + $0x484] ss:$12 sps:$4 sm:$0xff]   ;;  %v2683_v8 = vpack.c.bf16 %v22_v4, %v22_v4  ;;  %v2685_v9 = vpack.c.bf16 %v24_v5, %v24_v5  ;;  %v2279_v11 = vld [vmem:[%s3109_s1 + $0x480] ss:$12 sps:$4 sm:$0xff]   ;;  %v2320_v46 = vld [vmem:[%s3109_s1 + $0xc8] ss:$12 sps:$4 sm:$0xff]  }
  0x1a   :  { %v2285_v13 = vld [vmem:[%s3109_s1 + $0x170] ss:$12 sps:$4 sm:$0xff]   ;;  %v2286_v18 = vld [vmem:[%s3109_s1 + $0x378] ss:$12 sps:$4 sm:$0xff]   ;;  %v2291_v23 = vld [vmem:[%s3109_s1 + $0x360] ss:$12 sps:$4 sm:$0xff]  }
  0x1b   :  { %1036 = vmatpush1.bf16.msra.mxu0 %v2220_v26  ;;  %v2282_v14 = vld [vmem:[%s3109_s1 + $0x390] ss:$12 sps:$4 sm:$0xff]   ;;  %v2290_v21 = vld [vmem:[%s3109_s1 + $0x158] ss:$12 sps:$4 sm:$0xff]   ;;  %v2295_v25 = vld [vmem:[%s3109_s1 + $0x140] ss:$12 sps:$4 sm:$0xff]  }
  0x1c   :  { %1077 = vmatpush1.bf16.msra.mxu1 %v2221_v27  ;;  %1037 = vmatprep.subr.bf16.mxu0 %v2222_v28  ;;  %v28_v15 = vld [vmem:[%s3108_s0 + $0x30] sm:$0xff]  ;;  %v2294_v24 = vld [vmem:[%s3109_s1 + $0x98] ss:$12 sps:$4 sm:$0xff]   ;;  %v2299_v28 = vld [vmem:[%s3109_s1 + $0x80] ss:$12 sps:$4 sm:$0xff]  }
  0x1d   :  { %1078 = vmatprep.subr.bf16.mxu1 %v2224_v29  ;;  %v2713_v19 = vpack.c.bf16 %v28_v15, %v28_v15  ;;  %v2289_v20 = vld [vmem:[%s3109_s1 + $0xb0] ss:$12 sps:$4 sm:$0xff]   ;;  %v2298_v26 = vld [vmem:[%s3109_s1 + $0x34c] ss:$12 sps:$4 sm:$0xff]   ;;  %v2296_v27 = vld [vmem:[%s3109_s1 + $0x348] ss:$12 sps:$4 sm:$0xff]  }
  0x1e   :  { %v2293_v22 = vld [vmem:[%s3109_s1 + $0x364] ss:$12 sps:$4 sm:$0xff]   ;;  %v2300_v29 = vld [vmem:[%s3109_s1 + $0x128] ss:$12 sps:$4 sm:$0xff]   ;;  %v2356_v15 = vld [vmem:[%s3109_s1 + $0x1a0] ss:$12 sps:$4 sm:$0xff]  }
  0x1f   :  { %1038 = vmatpush1.bf16.msra.mxu0 %v2226_v30  ;;  %v2303_v30 = vld [vmem:[%s3109_s1 + $0x334] ss:$12 sps:$4 sm:$0xff]   ;;  %v2348_v4 = vld [vmem:[%s3109_s1 + $0x3dc] ss:$12 sps:$4 sm:$0xff]   ;;  %v2346_v5 = vld [vmem:[%s3109_s1 + $0x3d8] ss:$12 sps:$4 sm:$0xff]  }
  0x20   :  { %1079 = vmatpush1.bf16.msra.mxu1 %v2227_v31  ;;  %1039 = vmatprep.subr.bf16.mxu0 %v2228_v32  ;;  %v2301_v31 = vld [vmem:[%s3109_s1 + $0x330] ss:$12 sps:$4 sm:$0xff]   ;;  %v2304_v32 = vld [vmem:[%s3109_s1 + $0x68] ss:$12 sps:$4 sm:$0xff]  }
  0x21   :  { %1080 = vmatprep.subr.bf16.mxu1 %v2230_v33  ;;  %v2305_v33 = vld [vmem:[%s3109_s1 + $0x110] ss:$12 sps:$4 sm:$0xff]   ;;  %v2324_v50 = vld [vmem:[%s3109_s1 + $0x8] ss:$12 sps:$4 sm:$0xff]  }
  0x23   :  { %1040 = vmatpush2.bf16.msra.mxu0 %v2232_v34  ;;  %v2308_v34 = vld [vmem:[%s3109_s1 + $0x31c] ss:$12 sps:$4 sm:$0xff]  }
  0x24   :  { %1081 = vmatpush2.bf16.msra.mxu1 %v2233_v35  ;;  %1041 = vmatprep.subr.bf16.mxu0 %v2234_v36  ;;  %v2306_v35 = vld [vmem:[%s3109_s1 + $0x318] ss:$12 sps:$4 sm:$0xff]   ;;  %v2309_v36 = vld [vmem:[%s3109_s1 + $0x50] ss:$12 sps:$4 sm:$0xff]  }
  0x25   :  { %1082 = vmatprep.subr.bf16.mxu1 %v2236_v37  ;;  %v2310_v37 = vld [vmem:[%s3109_s1 + $0xf8] ss:$12 sps:$4 sm:$0xff]  }
  0x27   :  { %1042 = vmatpush2.bf16.msra.mxu0 %v2238_v38  ;;  %v2313_v38 = vld [vmem:[%s3109_s1 + $0x304] ss:$12 sps:$4 sm:$0xff]  }
  0x28   :  { %1083 = vmatpush2.bf16.msra.mxu1 %v2239_v39  ;;  %1043 = vmatprep.subr.bf16.mxu0 %v2240_v40  ;;  %v2311_v39 = vld [vmem:[%s3109_s1 + $0x300] ss:$12 sps:$4 sm:$0xff]   ;;  %v2314_v40 = vld [vmem:[%s3109_s1 + $0x38] ss:$12 sps:$4 sm:$0xff]  }
  0x29   :  { %1084 = vmatprep.subr.bf16.mxu1 %v2242_v41  ;;  %v2315_v41 = vld [vmem:[%s3109_s1 + $0xe0] ss:$12 sps:$4 sm:$0xff]  }
  0x2b   :  { %1044 = vmatpush2.bf16.msra.mxu0 %v2244_v42  ;;  %v2318_v42 = vld [vmem:[%s3109_s1 + $0x46c] ss:$12 sps:$4 sm:$0xff]  }
  0x2c   :  { %1085 = vmatpush2.bf16.msra.mxu1 %v2245_v43  ;;  %1045 = vmatprep.subr.bf16.mxu0 %v2246_v44  ;;  %v2316_v43 = vld [vmem:[%s3109_s1 + $0x468] ss:$12 sps:$4 sm:$0xff]  }
  0x2d   :  { %1086 = vmatprep.subr.bf16.mxu1 %v2248_v45  ;;  %v27_v44 = vld [vmem:[%s3108_s0 + $0x28] sm:$0xff] }
  0x2e   :  { %v2319_v45 = vld [vmem:[%s3109_s1 + $0x20] ss:$12 sps:$4 sm:$0xff]  }
  0x2f   :  { %1046 = vmatpush2.bf16.msra.mxu0 %v2250_v47  ;;  %v2799_v47 = vpack.c.bf16 %v27_v44, %v27_v44 }
  0x30   :  { %1087 = vmatpush2.bf16.msra.mxu1 %v2251_v48  ;;  %1047 = vmatprep.subr.bf16.mxu0 %v2252_v51  ;;  %v2323_v48 = vld [vmem:[%s3109_s1 + $0x454] ss:$12 sps:$4 sm:$0xff]   ;;  %v2325_v51 = vld [vmem:[%s3109_s1 + $0x2f0] ss:$12 sps:$4 sm:$0xff]  }
  0x31   :  { %1088 = vmatprep.subr.bf16.mxu1 %v2254_v53  ;;  %v2328_v53 = vld [vmem:[%s3109_s1 + $0x43c] ss:$12 sps:$4 sm:$0xff]  }
  0x33   :  { %1048 = vmatpush2.bf16.msra.mxu0 %v2256_v54  ;;  %v2326_v54 = vld [vmem:[%s3109_s1 + $0x438] ss:$12 sps:$4 sm:$0xff]  }
  0x34   :  { %1089 = vmatpush2.bf16.msra.mxu1 %v2257_v55  ;;  %1049 = vmatprep.subr.bf16.mxu0 %v2258_v56  ;;  %v2329_v55 = vld [vmem:[%s3109_s1 + $0x230] ss:$12 sps:$4 sm:$0xff]   ;;  %v2330_v56 = vld [vmem:[%s3109_s1 + $0x2d8] ss:$12 sps:$4 sm:$0xff]  }
  0x35   :  { %1090 = vmatprep.subr.bf16.mxu1 %v2260_v57  ;;  %v2333_v57 = vld [vmem:[%s3109_s1 + $0x424] ss:$12 sps:$4 sm:$0xff]  }
  0x37   :  { %1050 = vmatpush2.bf16.msra.mxu0 %v2262_v58  ;;  %v2331_v58 = vld [vmem:[%s3109_s1 + $0x420] ss:$12 sps:$4 sm:$0xff]  }
  0x38   :  { %1091 = vmatpush2.bf16.msra.mxu1 %v2263_v59  ;;  %1051 = vmatprep.subr.bf16.mxu0 %v2264_v60  ;;  %v2334_v59 = vld [vmem:[%s3109_s1 + $0x218] ss:$12 sps:$4 sm:$0xff]   ;;  %v2335_v60 = vld [vmem:[%s3109_s1 + $0x2c0] ss:$12 sps:$4 sm:$0xff]  }
  0x39   :  { %1092 = vmatprep.subr.bf16.mxu1 %v2266_v61  ;;  %v2338_v61 = vld [vmem:[%s3109_s1 + $0x40c] ss:$12 sps:$4 sm:$0xff]  }
  0x3b   :  { %1052 = vmatpush2.bf16.msra.mxu0 %v2268_v62  ;;  %v2336_v62 = vld [vmem:[%s3109_s1 + $0x408] ss:$12 sps:$4 sm:$0xff]  }
  0x3c   :  { %1093 = vmatpush2.bf16.msra.mxu1 %v2269_v63  ;;  %1053 = vmatprep.subr.bf16.mxu0 %v2270_v0  ;;  %v2339_v63 = vld [vmem:[%s3109_s1 + $0x200] ss:$12 sps:$4 sm:$0xff]   ;;  %v2340_v0 = vld [vmem:[%s3109_s1 + $0x2a8] ss:$12 sps:$4 sm:$0xff]  }
  0x3d   :  { %1094 = vmatprep.subr.bf16.mxu1 %v2272_v1  ;;  %v2343_v1 = vld [vmem:[%s3109_s1 + $0x3f4] ss:$12 sps:$4 sm:$0xff]  }
  0x3f   :  { %1054 = vmatpush2.bf16.msra.mxu0 %v2274_v2  ;;  %v2344_v2 = vld [vmem:[%s3109_s1 + $0x1e8] ss:$12 sps:$4 sm:$0xff]  }
  0x40   :  { %1095 = vmatpush2.bf16.msra.mxu1 %v2275_v3  ;;  %1105 = vmatprep.subr.bf16.mxu0 %v2278_v6  ;;  %v2345_v3 = vld [vmem:[%s3109_s1 + $0x290] ss:$12 sps:$4 sm:$0xff]  }
  0x41   :  { %1160 = vmatprep.subr.bf16.mxu1 %v2281_v7  ;;  %v2349_v6 = vld [vmem:[%s3109_s1 + $0x1d0] ss:$12 sps:$4 sm:$0xff]   ;;  %v2350_v7 = vld [vmem:[%s3109_s1 + $0x278] ss:$12 sps:$4 sm:$0xff]  }
  0x42   :  { %1056 = vmatmul.mubr.bf16.vlgmr.msra.gmra.mxu0 %v2683_v8 }
  0x43   :  { %1097 = vmatmul.mubr.bf16.vlgmr.msra.gmra.mxu1 %v2685_v9  ;;  %1106 = vmatpush1.bf16.msra.mxu0 %v2276_v10  ;;  %v2351_v10 = vld [vmem:[%s3109_s1 + $0x3c0] ss:$12 sps:$4 sm:$0xff]  }
  0x44   :  { %1161 = vmatpush1.bf16.msra.mxu1 %v2279_v11  ;;  %1107 = vmatprep.subr.bf16.mxu0 %v2284_v12  ;;  %v2354_v11 = vld [vmem:[%s3109_s1 + $0x1b8] ss:$12 sps:$4 sm:$0xff]  }
  0x45   :  { %1178 = vmatprep.mubr.bf16.mxu1 %v2433_v16  ;;  %2037 = vmatprep.subr.bf16.mxu1 %v2285_v13  ;;  %v26_v12 = vld [vmem:[%s3108_s0 + $0x20] sm:$0xff]  ;;  %v2358_v16 = vld [vmem:[%s3109_s1 + $0x3b0] ss:$12 sps:$4 sm:$0xff]  }
  0x46   :  { %1137 = vmatprep.mubr.bf16.mxu0 %v2799_v47  ;;  %v2355_v13 = vld [vmem:[%s3109_s1 + $0x260] ss:$12 sps:$4 sm:$0xff]  }
  0x47   :  { %1108 = vmatpush1.bf16.msra.mxu0 %v2282_v14  ;;  %v2357_v14 = vld [vmem:[%s3109_s1 + $0x470] ss:$12 sps:$4 sm:$0xff]  }
  0x48   :  { %1109 = vmatprep.subr.bf16.mxu0 %v2288_v17  ;;  %v33_v17 = vpack.c.bf16 %v26_v12, %v26_v12 }
  0x4b   :  { %2007 = vmatmul.mubr.msk.bf16.vlgmr.msra.gmra.mxu1 %vm1019_vm0, %v2713_v19  ;;  %1110 = vmatpush1.bf16.msra.mxu0 %v2286_v18  ;;  %v2359_v18 = vld [vmem:[%s3109_s1 + $0x248] ss:$12 sps:$4 sm:$0xff]  }
  0x4c   :  { %2038 = vmatpush3.bf16.msra.mxu1 %v2289_v20  ;;  %1111 = vmatprep.subr.bf16.mxu0 %v2293_v22  ;;  %v2361_v20 = vld [vmem:[%s3109_s1 + $0x458] ss:$12 sps:$4 sm:$0xff]  }
  0x4d   :  { %2039 = vmatprep.subr.bf16.mxu1 %v2290_v21  ;;  %1219 = vmatprep.mubr.bf16.mxu1 %v2614_v49  ;;  %v2321_v49 = vld [vmem:[%s3109_s1 + $0x450] ss:$12 sps:$4 sm:$0xff]   ;;  %v2360_v21 = vld [vmem:[%s3109_s1 + $0x188] ss:$12 sps:$4 sm:$0xff]   ;;  %v2362_v22 = vld [vmem:[%s3109_s1 + $0x398] ss:$12 sps:$4 sm:$0xff]  }
  0x4f   :  { %1112 = vmatpush1.bf16.msra.mxu0 %v2291_v23  ;;  %v2363_v23 = vld [vmem:[%s3109_s1 + $0x440] ss:$12 sps:$4 sm:$0xff]  }
  0x50   :  { %2040 = vmatpush3.bf16.msra.mxu1 %v2294_v24  ;;  %1113 = vmatprep.subr.bf16.mxu0 %v2298_v26 }
  0x51   :  { %2041 = vmatprep.subr.bf16.mxu1 %v2295_v25 }
  0x53   :  { %1114 = vmatpush1.bf16.msra.mxu0 %v2296_v27 }
  0x54   :  { %2042 = vmatpush3.bf16.msra.mxu1 %v2299_v28  ;;  %1115 = vmatprep.subr.bf16.mxu0 %v2303_v30 }
  0x55   :  { %2043 = vmatprep.subr.bf16.mxu1 %v2300_v29 }
  0x57   :  { %1116 = vmatpush1.bf16.msra.mxu0 %v2301_v31 }
  0x58   :  { %2044 = vmatpush3.bf16.msra.mxu1 %v2304_v32  ;;  %1117 = vmatprep.subr.bf16.mxu0 %v2308_v34 }
  0x59   :  { %2045 = vmatprep.subr.bf16.mxu1 %v2305_v33 }
  0x5b   :  { %1118 = vmatpush1.bf16.msra.mxu0 %v2306_v35 }
  0x5c   :  { %2046 = vmatpush3.bf16.msra.mxu1 %v2309_v36  ;;  %1119 = vmatprep.subr.bf16.mxu0 %v2313_v38 }
  0x5d   :  { %2047 = vmatprep.subr.bf16.mxu1 %v2310_v37 }
  0x5f   :  { %1120 = vmatpush1.bf16.msra.mxu0 %v2311_v39 }
  0x60   :  { %2048 = vmatpush3.bf16.msra.mxu1 %v2314_v40  ;;  %1121 = vmatprep.subr.bf16.mxu0 %v2318_v42 }
  0x61   :  { %2049 = vmatprep.subr.bf16.mxu1 %v2315_v41 }
  0x63   :  { %1122 = vmatpush2.bf16.msra.mxu0 %v2316_v43 }
  0x64   :  { %2050 = vmatpush3.bf16.msra.mxu1 %v2319_v45  ;;  %1123 = vmatprep.subr.bf16.mxu0 %v2323_v48 }
  0x65   :  { %2051 = vmatprep.subr.bf16.mxu1 %v2320_v46 }
  0x67   :  { %1124 = vmatpush2.bf16.msra.mxu0 %v2321_v49 }
  0x68   :  { %2052 = vmatpush3.bf16.msra.mxu1 %v2324_v50  ;;  %1125 = vmatprep.subr.bf16.mxu0 %v2328_v53 }
  0x69   :  { %2059 = vmatprep.subr.bf16.mxu1 %v2325_v51 }
  0x6b   :  { %1220 = vmatmul.mubr.bf16.vlgmr.msra.gmra.mxu1 %v2683_v8  ;;  %1126 = vmatpush2.bf16.msra.mxu0 %v2326_v54  ;;  %v2353_v8 = vld [vmem:[%s3109_s1 + $0x3c4] ss:$12 sps:$4 sm:$0xff]  }
  0x6c   :  { %2060 = vmatpush3.bf16.msra.mxu1 %v2329_v55  ;;  %1127 = vmatprep.subr.bf16.mxu0 %v2333_v57 }
  0x6d   :  { %2061 = vmatprep.subr.bf16.mxu1 %v2330_v56  ;;  %1259 = vmatprep.mubr.bf16.mxu1 %v2622_v52  ;;  %v2341_v52 = vld [vmem:[%s3109_s1 + $0x3f0] ss:$12 sps:$4 sm:$0xff]  }
  0x6f   :  { %1128 = vmatpush2.bf16.msra.mxu0 %v2331_v58 }
  0x70   :  { %2062 = vmatpush3.bf16.msra.mxu1 %v2334_v59  ;;  %1129 = vmatprep.subr.bf16.mxu0 %v2338_v61 }
  0x71   :  { %2063 = vmatprep.subr.bf16.mxu1 %v2335_v60 }
  0x73   :  { %1130 = vmatpush2.bf16.msra.mxu0 %v2336_v62 }
  0x74   :  { %2064 = vmatpush3.bf16.msra.mxu1 %v2339_v63  ;;  %1131 = vmatprep.subr.bf16.mxu0 %v2343_v1 }
  0x75   :  { %2065 = vmatprep.subr.bf16.mxu1 %v2340_v0 }
  0x77   :  { %1132 = vmatpush2.bf16.msra.mxu0 %v2341_v52 }
  0x78   :  { %2066 = vmatpush3.bf16.msra.mxu1 %v2344_v2  ;;  %1133 = vmatprep.subr.bf16.mxu0 %v2348_v4 }
  0x79   :  { %2067 = vmatprep.subr.bf16.mxu1 %v2345_v3 }
  0x7b   :  { %1134 = vmatpush2.bf16.msra.mxu0 %v2346_v5 }
  0x7c   :  { %2068 = vmatpush3.bf16.msra.mxu1 %v2349_v6  ;;  %1135 = vmatprep.subr.bf16.mxu0 %v2353_v8 }
  0x7d   :  { %2069 = vmatprep.subr.bf16.mxu1 %v2350_v7 }
  0x7f   :  { %1136 = vmatpush2.bf16.msra.mxu0 %v2351_v10 }
  0x80   :  { %2070 = vmatpush3.bf16.msra.mxu1 %v2354_v11  ;;  %2081 = vmatprep.subr.bf16.mxu0 %v2357_v14 }
  0x81   :  { %2071 = vmatprep.subr.bf16.mxu1 %v2355_v13 }
  0x82   :  { %1138 = vmatmul.mubr.bf16.vlgmr.msra.gmra.mxu0 %v33_v17 }
  0x83   :  { %2082 = vmatpush3.bf16.msra.mxu0 %v2358_v16  ;;  %1299 = vmatprep.mubr.bf16.mxu0 %v2799_v47 }
  0x84   :  { %2072 = vmatpush3.bf16.msra.mxu1 %v2356_v15  ;;  %2083 = vmatprep.subr.bf16.mxu0 %v2361_v20 }
  0x85   :  { %2073 = vmatprep.subr.bf16.mxu1 %v2359_v18 }
  0x86   :  { %10 = vsyncpa [#allocation3], 0  ;;  %v2364_v24 = vld [vmem:[%s3109_s1 + $0x380] ss:$12 sps:$4 sm:$0xff]   ;;  %v2375_v25 = vld [vmem:[%s3109_s1 + $0x488] ss:$12 sps:$4 sm:$0xff]  }
  0x87   :  { %2084 = vmatpush3.bf16.msra.mxu0 %v2362_v22  ;;  %v2365_v26 = vld [vmem:[%s3109_s1 + $0x428] ss:$12 sps:$4 sm:$0xff]   ;;  %v2434_v27 = vmov 0.0   ;;  %v2367_v29 = vld [vmem:[%s3109_s1 + $0x410] ss:$12 sps:$4 sm:$0xff]   ;;  %vm2435_vm1 = vmmov 0  }
  0x88   :  { %2074 = vmatpush3.bf16.msra.mxu1 %v2360_v21  ;;  %2085 = vmatprep.subr.bf16.mxu0 %v2363_v23  ;;  %v2366_v28 = vld [vmem:[%s3109_s1 + $0x368] ss:$12 sps:$4 sm:$0xff]   ;;  %v2369_v30 = vld [vmem:[%s3109_s1 + $0x3f8] ss:$12 sps:$4 sm:$0xff]   ;;  %v2371_v32 = vld [vmem:[%s3109_s1 + $0x3e0] ss:$12 sps:$4 sm:$0xff]  }
  0x89   :  { %2140 = vmatprep.subr.bf16.mxu1 %v2434_v27  ;;  %v2370_v31 = vld [vmem:[%s3109_s1 + $0x338] ss:$12 sps:$4 sm:$0xff]   ;;  %v2372_v33 = vld [vmem:[%s3109_s1 + $0x320] ss:$12 sps:$4 sm:$0xff]   ;;  %v2374_v34 = vld [vmem:[%s3109_s1 + $0x308] ss:$12 sps:$4 sm:$0xff]  }
  0x8a   :  { %v2376_v35 = vld [vmem:[%s3110_s2 + $0x78] sm:$0xff]   ;;  %v2378_v37 = vld [vmem:[%s3110_s2 + $0x70] sm:$0xff]   ;;  %v2380_v39 = vld [vmem:[%s3110_s2 + $0x68] sm:$0xff]   ;;  %vm1359_vm2 = vcmask 359424   ;;  %vm1616_vm3 = vcmask 1045504  }
  0x8b   :  { %1260 = vmatmul.mubr.bf16.vlgmr.msra.gmra.mxu1 %v2685_v9  ;;  %2086 = vmatpush3.bf16.msra.mxu0 %v2364_v24  ;;  %v2368_v9 = vld [vmem:[%s3109_s1 + $0x350] ss:$12 sps:$4 sm:$0xff]   ;;  %v2381_v40 = vld [vmem:[%s3110_s2 + $0x28] sm:$0xff]   ;;  %v2382_v41 = vld [vmem:[%s3110_s2 + $0x60] sm:$0xff]  }
  0x8c   :  { %2141 = vmatpush3.bf16.msra.mxu1 %v2375_v25  ;;  %2087 = vmatprep.subr.bf16.mxu0 %v2365_v26  ;;  %v2377_v36 = vld [vmem:[%s3110_s2 + $0x38] sm:$0xff]   ;;  %v2379_v38 = vld [vmem:[%s3110_s2 + $0x30] sm:$0xff]   ;;  %v2383_v42 = vld [vmem:[%s3110_s2 + $0x20] sm:$0xff]  }
  0x8d   :  { %2142 = vmatprep.mubr.msk.bf16.mxu1 %vm2435_vm1, %v2434_v27  ;;  %2105 = vmatprep.subr.bf16.mxu1 %v2376_v35  ;;  %v2384_v43 = vld [vmem:[%s3110_s2 + $0x58] sm:$0xff]   ;;  %v2386_v45 = vld [vmem:[%s3110_s2 + $0x50] sm:$0xff]   ;;  %v2388_v47 = vld [vmem:[%s3110_s2 + $0x48] sm:$0xff]  }
  0x8e   :  { %v2385_v44 = vld [vmem:[%s3110_s2 + $0x18] sm:$0xff]   ;;  %v2387_v46 = vld [vmem:[%s3110_s2 + $0x10] sm:$0xff]   ;;  %v2389_v48 = vld [vmem:[%s3110_s2 + $0x8] sm:$0xff]  }
  0x8f   :  { %2088 = vmatpush3.bf16.msra.mxu0 %v2366_v28  ;;  %v2390_v49 = vld [vmem:[%s3110_s2 + $0x40] sm:$0xff]  }
  0x90   :  { %2089 = vmatprep.subr.bf16.mxu0 %v2367_v29  ;;  %v2391_v50 = vld [vmem:[%s3110_s2] sm:$0xff]  }
  0x93   :  { %2143 = vmatmul.mubr.msk.bf16.vlgmr.msra.gmra.mxu1 %vm1019_vm0, %v2713_v19  ;;  %2090 = vmatpush3.bf16.msra.mxu0 %v2368_v9  ;;  %v2373_v19 = vld [vmem:[%s3109_s1 + $0x3c8] ss:$12 sps:$4 sm:$0xff]  }
  0x94   :  { %2091 = vmatprep.subr.bf16.mxu0 %v2369_v30  ;;  %2106 = vmatpush3.bf16.msra.mxu1 %v2377_v36 }
  0x95   :  { %2107 = vmatprep.subr.bf16.mxu1 %v2378_v37 }
  0x97   :  { %2092 = vmatpush3.bf16.msra.mxu0 %v2370_v31 }
  0x98   :  { %2093 = vmatprep.subr.bf16.mxu0 %v2371_v32  ;;  %2108 = vmatpush3.bf16.msra.mxu1 %v2379_v38 }
  0x99   :  { %2109 = vmatprep.subr.bf16.mxu1 %v2380_v39 }
  0x9b   :  { %2094 = vmatpush3.bf16.msra.mxu0 %v2372_v33 }
  0x9c   :  { %2095 = vmatprep.subr.bf16.mxu0 %v2373_v19  ;;  %2110 = vmatpush3.bf16.msra.mxu1 %v2381_v40 }
  0x9d   :  { %2111 = vmatprep.subr.bf16.mxu1 %v2382_v41 }
  0x9f   :  { %2096 = vmatpush3.bf16.msra.mxu0 %v2374_v34 }
  0xa0   :  { %2156 = vmatprep.subr.bf16.mxu0 %v2434_v27  ;;  %2112 = vmatpush3.bf16.msra.mxu1 %v2383_v42 }
  0xa1   :  { %2113 = vmatprep.subr.bf16.mxu1 %v2384_v43 }
  0xa2   :  { %1300 = vmatmul.mubr.bf16.vlgmr.msra.gmra.mxu0 %v33_v17 }
  0xa3   :  { %2172 = vmatprep.mubr.msk.bf16.mxu0 %vm2435_vm1, %v2434_v27 }
  0xa4   :  { %2114 = vmatpush3.bf16.msra.mxu1 %v2385_v44 }
  0xa5   :  { %2115 = vmatprep.subr.bf16.mxu1 %v2386_v45 }
  0xa8   :  { %2116 = vmatpush3.bf16.msra.mxu1 %v2387_v46 }
  0xa9   :  { %2117 = vmatprep.subr.bf16.mxu1 %v2388_v47 }
  0xac   :  { %2118 = vmatpush3.bf16.msra.mxu1 %v2389_v48 }
  0xad   :  { %2119 = vmatprep.subr.bf16.mxu1 %v2390_v49 }
  0xb0   :  { %2120 = vmatpush3.bf16.msra.mxu1 %v2391_v50 }
  0xb1   :  { %2146 = vmatprep.subr.bf16.mxu1 %v2434_v27 }
 0x102   :  { %v1057_v51 = vpop.f32.mrf.mxu0 }
 0x103   :  { %v1098_v53 = vpop.f32.mrf.mxu1 }
 0x104   :  { %v1099_v54 = vadd.f32 %v1098_v53, %v1057_v51  ;;  %v1059_v55 = vpop.f32.mrf.mxu0 }
 0x105   :  { %v1100_v56 = vpop.f32.mrf.mxu1 }
 0x106   :  { %v1061_v57 = vpop.f32.mrf.mxu0  ;;  %v1101_v5 = vadd.f32 %v1100_v56, %v1059_v55 }
 0x107   :  { %v1102_v58 = vpop.f32.mrf.mxu1 }
 0x108   :  { %v1062_v59 = vpop.f32.mrf.mxu0 }
 0x109   :  { %v1103_v60 = vpop.f32.mrf.mxu1 }
 0x10a   :  { %v1426_v60 = vlaneseq }
 0x10b   :  { %v1180_v61 = vpop.f32.mrf.mxu1 }
 0x10d   :  { %v1182_v62 = vpop.f32.mrf.mxu1 }
 0x10f   :  { %v1184_v63 = vpop.f32.mrf.mxu1 }
 0x111   :  { %v1185_v0 = vpop.f32.mrf.mxu1 }
 0x12b   :  { %v2053_v1 = vpop.f32.mrf.mxu1 }
 0x12d   :  { %v2054_v52 = vpop.f32.mrf.mxu1 }
 0x12f   :  { %v2056_v2 = vpop.f32.mrf.mxu1 }
 0x131   :  { %v2057_v3 = vpop.f32.mrf.mxu1 }
 0x132   :  { %v3022_v3 = vshrl.u32 %v1426_v60, 7 }
 0x142   :  { %v1139_v4 = vpop.f32.mrf.mxu0 }
 0x143   :  { %v1140_v6 = vadd.f32 %v1139_v4, %v1099_v54 }
 0x144   :  { %v1141_v7 = vpop.f32.mrf.mxu0 }
 0x145   :  { %v3010_v8 = vadd.f32 %v1180_v61, %v1140_v6  ;;  %v1142_v10 = vadd.f32 %v1141_v7, %v1101_v5  ;;  %v3027_v5 = vld [vmem:[%s3112_s4] sm:$0xff] }
 0x146   :  { %v1143_v11 = vpop.f32.mrf.mxu0 }
 0x147   :  { %v1347_v12 = vrot.slane %v3010_v8, 4  ;;  %v1371_v13 = vmul.f32 %v3010_v8, %v3010_v8  ;;  %v3015_v14 = vadd.f32 %v1182_v62, %v1142_v10  ;;  %v2055_v62 = vadd.f32 %v2054_v52, %v2053_v1  ;;  %v37_v11 = vld [vmem:[%s3112_s4 + $0x8] sm:$0xff] }
 0x148   :  { %v1144_v15 = vpop.f32.mrf.mxu0  ;;  %v3035_v1 = vsub.s32 0, %v3022_v3 }
 0x149   :  { %v1348_v16 = vadd.f32 %v1347_v12, %v3010_v8  ;;  %v1374_v17 = vrot.slane %v1371_v13, 4  ;;  %v1353_v18 = vrot.slane %v3015_v14, 4  ;;  %v1372_v20 = vmul.f32 %v3015_v14, %v3015_v14 }
 0x14b   :  { %v2075_v21 = vpop.f32.mrf.mxu1  ;;  %v1349_v22 = vrot.slane %v1348_v16, 2  ;;  %v1375_v23 = vadd.f32 %v1374_v17, %v1371_v13  ;;  %v1354_v24 = vadd.f32 %v1353_v18, %v3015_v14  ;;  %v1380_v25 = vrot.slane %v1372_v20, 4 }
 0x14d   :  { %v2076_v26 = vpop.f32.mrf.mxu1  ;;  %v1350_v28 = vadd.f32 %v1349_v22, %v1348_v16  ;;  %v1376_v29 = vrot.slane %v1375_v23, 2  ;;  %v1355_v9 = vrot.slane %v1354_v24, 2  ;;  %v1381_v30 = vadd.f32 %v1380_v25, %v1372_v20 }
 0x14e   :  { %v2077_v59 = vadd.f32 %v2076_v26, %v2075_v21  ;;  %v1443_v21 = vsub.s32 1, %v3022_v3 }
 0x14f   :  { %v2078_v31 = vpop.f32.mrf.mxu1  ;;  %v1351_v32 = vrot.slane %v1350_v28, 1  ;;  %v1377_v33 = vadd.f32 %v1376_v29, %v1375_v23  ;;  %v1356_v19 = vadd.f32 %v1355_v9, %v1354_v24  ;;  %v1382_v34 = vrot.slane %v1381_v30, 2 }
 0x150   :  { %v1262_v0 = vadd.f32 %v2077_v59, %v2055_v62 }
 0x151   :  { %v2079_v35 = vpop.f32.mrf.mxu1  ;;  %v1352_v36 = vadd.f32 %v1351_v32, %v1350_v28  ;;  %v1378_v37 = vrot.slane %v1377_v33, 1  ;;  %v1357_v38 = vrot.slane %v1356_v19, 1  ;;  %v1383_v39 = vadd.f32 %v1382_v34, %v1381_v30 }
 0x153   :  { %v1341_v40 = vpop.f32.mrf.mxu1  ;;  %v1368_v41 = vmul.f32 0.125, %v1352_v36  ;;  %v1379_v42 = vadd.f32 %v1378_v37, %v1377_v33  ;;  %v1384_v43 = vrot.slane %v1383_v39, 1  ;;  %v1358_v44 = vadd.f32 %v1357_v38, %v1356_v19 }
 0x155   :  { %v2144_v45 = vpop.f32.mrf.mxu1  ;;  %v1393_v46 = vmul.f32 0.125, %v1379_v42  ;;  %v1396_v47 = vmul.f32 %v1368_v41, %v1368_v41  ;;  %v1385_v48 = vadd.f32 %v1384_v43, %v1383_v39  ;;  %v1369_v49 = vmul.f32 0.125, %v1358_v44  ;;  %v2392_v43 = vld [vmem:[%s3110_s2 + $0x90] sm:$0x3f]  }
 0x157   :  { %v1344_v50 = vpop.f32.mrf.mxu1  ;;  %v1399_v51 = vsub.f32 %v1393_v46, %v1396_v47  ;;  %v1394_v53 = vmul.f32 0.125, %v1385_v48  ;;  %v1397_v54 = vmul.f32 %v1369_v49, %v1369_v49 }
 0x159   :  { %v2145_v55 = vpop.f32.mrf.mxu1  ;;  %v1402_v56 = vadd.f32 1e-05, %v1399_v51  ;;  %v1400_v57 = vsub.f32 %v1394_v53, %v1397_v54  ;;  %v2393_v54 = vld [vmem:[%s3110_s2 + $0x88] sm:$0xff]  }
 0x15b   :  { %2403 = vrsqrt.f32 %v1402_v56  ;;  %v1403_v58 = vadd.f32 1e-05, %v1400_v57  ;;  %v2394_v57 = vld [vmem:[%s3110_s2 + $0x80] sm:$0xff]  }
 0x15d   :  { %2405 = vrsqrt.f32 %v1403_v58  ;;  %v38_v58 = vld [vmem:[%s3112_s4 + $0x10] sm:$0xff] }
 0x162   :  { %v2097_v61 = vpop.f32.mrf.mxu0 }
 0x164   :  { %v2098_v63 = vpop.f32.mrf.mxu0 }
 0x165   :  { %v2099_v2 = vadd.f32 %v2098_v63, %v2097_v61 }
 0x166   :  { %v2100_v4 = vpop.f32.mrf.mxu0 }
 0x167   :  { %v1302_v6 = vadd.f32 %v2099_v2, %v1262_v0 }
 0x168   :  { %v2404_v7 = vpop.eup %2403  ;;  %v2101_v10 = vpop.f32.mrf.mxu0 }
 0x169   :  { %v3032_v12 = vadd.f32 %v1341_v40, %v1302_v6  ;;  %v1408_v52 = vmul.f32 %v2404_v7, %v3027_v5 }
 0x16a   :  { %v2406_v13 = vpop.eup %2405 }
 0x16b   :  { %v1373_v15 = vmul.f32 %v3032_v12, %v3032_v12  ;;  %v1409_v16 = vmul.f32 %v2406_v13, %v37_v11  ;;  %v1411_v17 = vmul.f32 %v1408_v52, %v1368_v41  ;;  %v1360_v18 = vsel %vm1359_vm2, %v3032_v12, 0.0  ;;  %v2399_v13 = vld [vmem:[%s3111_s3 + $0x18] sm:$0xff]  }
 0x16c   :  { %v1429_v23 = vrot.slane %v1408_v52, %v3035_v1  ;;  %v1361_v24 = vrot.slane %v1360_v18, 4  ;;  %v2398_v52 = vld [vmem:[%s3111_s3 + $0x20] sm:$0xff]  }
 0x16d   :  { %v1412_v20 = vmul.f32 %v1409_v16, %v1369_v49  ;;  %v1417_v22 = vrot.slane %v1411_v17, 7  ;;  %v1386_v25 = vsel %vm1359_vm2, %v1373_v15, 0.0  ;;  %v1433_v28 = vrot.slane %v1409_v16, %v3035_v1  ;;  %v2400_v15 = vld [vmem:[%s3111_s3 + $0x10] sm:$0xff]   ;;  %v2401_v16 = vld [vmem:[%s3111_s3 + $0x8] sm:$0xff]   ;;  %v2402_v17 = vld [vmem:[%s3111_s3] sm:$0xff]  }
 0x16e   :  { %v1387_v9 = vrot.slane %v1386_v25, 4  ;;  %v1362_v30 = vadd.f32 %v1361_v24, %v1360_v18  ;;  %v1438_v32 = vmul.f32 %v1429_v23, %v3010_v8 }
 0x16f   :  { %v1418_v26 = vrot.slane %v1412_v20, 7  ;;  %v1423_v29 = vsub.f32 %v3027_v5, %v1417_v22  ;;  %v1439_v35 = vmul.f32 %v1433_v28, %v3015_v14  ;;  %v1618_v14 = vsel %vm1616_vm3, %v2392_v43, 0 }
 0x170   :  { %v1388_v19 = vadd.f32 %v1387_v9, %v1386_v25  ;;  %v1363_v34 = vrot.slane %v1362_v30, 2 }
 0x171   :  { %v1424_v31 = vsub.f32 %v37_v11, %v1418_v26  ;;  %v1444_v33 = vrot.slane %v1423_v29, %v1443_v21  ;;  %v2395_v11 = vld [vmem:[%s3111_s3 + $0x38] sm:$0xff]  }
 0x172   :  { %v1389_v38 = vrot.slane %v1388_v19, 2  ;;  %v1364_v39 = vadd.f32 %v1363_v34, %v1362_v30  ;;  %2157 = vmatpush3.bf16.msra.mxu0 %v2395_v11 }
 0x173   :  { %v1448_v36 = vrot.slane %v1424_v31, %v1443_v21  ;;  %v1453_v37 = vadd.f32 %v1444_v33, %v1438_v32  ;;  %2158 = vmatprep.subr.bf16.mxu0 %v2434_v27 }
 0x174   :  { %v1390_v41 = vadd.f32 %v1389_v38, %v1388_v19  ;;  %v1365_v44 = vrot.slane %v1364_v39, 1 }
 0x175   :  { %v1454_v40 = vadd.f32 %v1448_v36, %v1439_v35  ;;  %v1456_v42 = vmax.f32 %v1453_v37, 0.0 }
 0x176   :  { %v1391_v8 = vrot.slane %v1390_v41, 1  ;;  %v1366_v46 = vadd.f32 %v1365_v44, %v1364_v39 }
 0x177   :  { %v1457_v45 = vmax.f32 %v1454_v40, 0.0  ;;  %v1459_v49 = vpack.c.bf16 %v1456_v42, %v1456_v42 }
 0x178   :  { %v1392_v48 = vadd.f32 %v1391_v8, %v1390_v41  ;;  %v1370_v50 = vmul.f32 0.125, %v1366_v46  ;;  %v1727_v46 = vsub.s32 2, %v3022_v3 }
 0x179   :  { %v1460_v47 = vpack.c.bf16 %v1457_v45, %v1457_v45 }
 0x17a   :  { %v1395_v51 = vmul.f32 0.125, %v1392_v48  ;;  %v1398_v53 = vmul.f32 %v1370_v50, %v1370_v50 }
 0x17b   :  { %1652 = vmatprep.mubr.bf16.mxu1 %v1460_v47 }
 0x17c   :  { %1653 = vmatmul.mubr.bf16.vlgmr.msra.gmra.mxu1 %v1459_v49  ;;  %v1401_v55 = vsub.f32 %v1395_v51, %v1398_v53 }
 0x17d   :  { %2147 = vmatpush3.bf16.msra.mxu1 %v1618_v14  ;;  %2152 = vmatprep.mubr.msk.bf16.mxu1 %vm2435_vm1, %v2434_v27  ;;  %v1732_v14 = vsub.s32 3, %v3022_v3 }
 0x17e   :  { %2148 = vmatprep.subr.bf16.mxu1 %v2434_v27  ;;  %v1404_v56 = vadd.f32 1e-05, %v1401_v55 }
 0x180   :  { %2407 = vrsqrt.f32 %v1404_v56 }
 0x181   :  { %2149 = vmatpush3.bf16.msra.mxu1 %v2393_v54 }
 0x182   :  { %2150 = vmatprep.subr.bf16.mxu1 %v2434_v27 }
 0x185   :  { %2151 = vmatpush3.bf16.msra.mxu1 %v2394_v57  ;;  %v1755_v57 = vsub.s32 4, %v3022_v3 }
 0x18d   :  { %v2408_v59 = vpop.eup %2407 }
 0x18e   :  { %v1410_v60 = vmul.f32 %v2408_v59, %v38_v58 }
 0x190   :  { %v1413_v61 = vmul.f32 %v1410_v60, %v1370_v50  ;;  %v1437_v63 = vrot.slane %v1410_v60, %v3035_v1  ;;  %v2396_v1 = vld [vmem:[%s3111_s3 + $0x30] sm:$0xff]  }
 0x191   :  { %2159 = vmatpush3.bf16.msra.mxu0 %v2396_v1 }
 0x192   :  { %v1419_v62 = vrot.slane %v1413_v61, 7  ;;  %v1440_v2 = vmul.f32 %v1437_v63, %v3032_v12  ;;  %2160 = vmatprep.subr.bf16.mxu0 %v2434_v27  ;;  %v2397_v12 = vld [vmem:[%s3111_s3 + $0x28] sm:$0xff]   ;;  %s2436_s3 = smov [#allocation2]  }
 0x193   :  { %s1852_s28 = sshll.u32 %s2436_s3, 4  ;;  %s1853_s28 = int_to_ptr.vmem [resolvable:$true] %s1852_s28 }
 0x194   :  { %v1425_v0 = vsub.f32 %v38_v58, %v1419_v62  ;;  %v1756_v58 = vrot.slane %v3027_v5, %v1755_v57  ;;  %s2411_s29 = scalar_lea.vmem %s1853_s28, 128  ;;  %p2416_p1 = scmp.lt.s32.totalorder %s1853_s28, %s1853_s28 }
 0x195   :  { %2161 = vmatpush3.bf16.msra.mxu0 %v2397_v12  ;;  %p2412_p0 = scmp.ne.s32.totalorder %s1853_s28, %s2411_s29  ;;  %p2417_p2 = scmp.lt.s32.totalorder %s2411_s29, %s2411_s29 }
 0x196   :  { %v1452_v4 = vrot.slane %v1425_v0, %v1443_v21  ;;  %2162 = vmatprep.subr.bf16.mxu0 %v2434_v27 }
 0x197   :  { %p2418_p3 = por %p2417_p2, %p2416_p1 }
 0x198   :  { %v1455_v6 = vadd.f32 %v1452_v4, %v1440_v2 }
 0x199   :  { %2163 = vmatpush3.bf16.msra.mxu0 %v2398_v52  ;;  %p2419_p4 = pnand %p2418_p3, %p2412_p0 }
 0x19a   :  { %v1458_v7 = vmax.f32 %v1455_v6, 0.0  ;;  %2164 = vmatprep.subr.bf16.mxu0 %v2434_v27 }
 0x19c   :  { %v1461_v10 = vpack.c.bf16 %v1458_v7, %v1458_v7 }
 0x19d   :  { %2165 = vmatpush3.bf16.msra.mxu0 %v2399_v13 }
 0x19e   :  { %2153 = vmatmul.mubr.msk.bf16.vlgmr.msra.gmra.mxu1 %vm1359_vm2, %v1461_v10  ;;  %2166 = vmatprep.subr.bf16.mxu0 %v2434_v27 }
 0x1a1   :  { %2167 = vmatpush3.bf16.msra.mxu0 %v2400_v15 }
 0x1a2   :  { %2168 = vmatprep.subr.bf16.mxu0 %v2434_v27 }
 0x1a5   :  { %2169 = vmatpush3.bf16.msra.mxu0 %v2401_v16 }
 0x1a6   :  { %2170 = vmatprep.subr.bf16.mxu0 %v2434_v27 }
 0x1a9   :  { %2171 = vmatpush3.bf16.msra.mxu0 %v2402_v17 }
 0x23c   :  { %v2121_v18 = vpop.f32.mrf.mxu1 }
 0x23e   :  { %v2122_v20 = vpop.f32.mrf.mxu1 }
 0x23f   :  { %v2123_v23 = vadd.f32 %v2122_v20, %v2121_v18 }
 0x240   :  { %v2124_v21 = vpop.f32.mrf.mxu1 }
 0x242   :  { %v2125_v22 = vpop.f32.mrf.mxu1 }
 0x25e   :  { %v1694_v24 = vpop.f32.mrf.mxu1 }
 0x25f   :  { %v1695_v25 = vadd.f32 %v2123_v23, %v1694_v24 }
 0x260   :  { %v2154_v26 = vpop.f32.mrf.mxu1 }
 0x261   :  { %v1700_v28 = vrot.slane %v1695_v25, 4  ;;  %v1707_v29 = vmul.f32 %v1695_v25, %v1695_v25 }
 0x262   :  { %v1697_v9 = vpop.f32.mrf.mxu1 }
 0x263   :  { %v1701_v30 = vadd.f32 %v1700_v28, %v1695_v25  ;;  %v1708_v31 = vrot.slane %v1707_v29, 4 }
 0x264   :  { %v2155_v32 = vpop.f32.mrf.mxu1 }
 0x265   :  { %v1702_v33 = vrot.slane %v1701_v30, 2  ;;  %v1709_v19 = vadd.f32 %v1708_v31, %v1707_v29 }
 0x267   :  { %v1703_v34 = vadd.f32 %v1702_v33, %v1701_v30  ;;  %v1710_v35 = vrot.slane %v1709_v19, 2 }
 0x269   :  { %v1704_v27 = vrot.slane %v1703_v34, 1  ;;  %v1711_v36 = vadd.f32 %v1710_v35, %v1709_v19 }
 0x26b   :  { %v1705_v37 = vadd.f32 %v1704_v27, %v1703_v34  ;;  %v1712_v38 = vrot.slane %v1711_v36, 1 }
 0x26d   :  { %v1706_v39 = vmul.f32 0.125, %v1705_v37  ;;  %v1713_v40 = vadd.f32 %v1712_v38, %v1711_v36 }
 0x26f   :  { %v1714_v41 = vmul.f32 0.125, %v1713_v40  ;;  %v1715_v42 = vmul.f32 %v1706_v39, %v1706_v39 }
 0x271   :  { %v1716_v43 = vsub.f32 %v1714_v41, %v1715_v42 }
 0x273   :  { %v1717_v44 = vadd.f32 1e-05, %v1716_v43 }
 0x275   :  { %2409 = vrsqrt.f32 %v1717_v44 }
 0x282   :  { %v2410_v45 = vpop.eup %2409 }
 0x283   :  { %v1719_v8 = vmul.f32 %v2410_v45, %v3027_v5 }
 0x285   :  { %v1720_v47 = vmul.f32 %v1719_v8, %v1706_v39  ;;  %v1728_v48 = vrot.slane %v1719_v8, %v1727_v46 }
 0x287   :  { %v1722_v49 = vrot.slane %v1720_v47, 7  ;;  %v1729_v51 = vmul.f32 %v1728_v48, %v1695_v25 }
 0x289   :  { %v1724_v50 = vsub.f32 %v3027_v5, %v1722_v49 }
 0x28b   :  { %v1733_v53 = vrot.slane %v1724_v50, %v1732_v14 }
 0x28d   :  { %v1734_v54 = vadd.f32 %v1733_v53, %v1729_v51 }
 0x28f   :  { %v1735_v55 = vmax.f32 %v1734_v54, 0.0 }
 0x291   :  { %v1736_v56 = vpack.c.bf16 %v1735_v55, %v1735_v55 }
 0x293   :  { %2173 = vmatmul.mubr.bf16.vlgmr.msra.gmra.mxu0 %v1736_v56 }
 0x353   :  { %v1839_v59 = vpop.f32.mrf.mxu0 }
 0x354   :  { %v1840_v60 = vadd.f32 %v1839_v59, %v1756_v58 }
 0x355   :  { %v2174_v61 = vpop.f32.mrf.mxu0 }
 0x356   :  { %1845 = vst [vmem:[#allocation2] sm:$0xff] %v1840_v60 }
 0x357   :  { %v1842_v62 = vpop.f32.mrf.mxu0 }
 0x358   :  { %2422 = shalt.err (!%p2419_p4)
}
 0x359   :  { %1855 = dma.vmem_to_hbm [thread:$0]  %s1853_s28, 128, %s3113_s5, [#allocation3]   ;;  %v2175_v3 = vpop.f32.mrf.mxu0 }
 0x35a   :  { %2431 = dma.done.wait [#allocation3], 128  }
 0x35b   :  { %2432 = vsyncadd [#allocation3], 4294967168 }
 0x35c   :  { %1859 = vsyncpa [#allocation3], 1 }

</bundles_post_ra>
